<compile_context>
chip_gen: v6e
topology: v6e:2x2x1
jax: 0.10.0
libtpu: 0.0.40
codegen_flags: <defaults>
</compile_context>

<pallas_src>
import functools

import jax
import jax.numpy as jnp
from jax.experimental import pallas as pl
from jax.experimental.pallas import tpu as pltpu


_LANES = 512                       # lane-dense last dim (multiple of 128)
_TILE_BYTES = 4 * 1024 * 1024      # per-tile DMA target (sized in bytes)
_FUSED_MAX_BYTES = 4 * 1024 * 1024  # single fused call up to one tile


def _ceil_to(v, m):
    return ((v + m - 1) // m) * m


# ---------------------------------------------------------------------------
# Fused path: one call, whole slab in VMEM: mean + subtract.
# ---------------------------------------------------------------------------
def _fused_kernel(x_ref, o_ref, *, inv_n, compute_dtype):
    x = x_ref[...]
    mean = (jnp.sum(x.astype(jnp.float32)) * jnp.float32(inv_n)).astype(compute_dtype)
    o_ref[...] = (x.astype(compute_dtype) - mean).astype(o_ref.dtype)


# ---------------------------------------------------------------------------
# Tiled pass 1: per-tile (8, 512) f32 partial sums; fully parallel grid.
# Row-group accumulation keeps sublanes/lanes (VALU adds only); the scalar
# collapse happens in the tiny wrapper combine.
# ---------------------------------------------------------------------------
def _partial_sum_kernel(x_ref, part_ref, *, tile_rows, mask_rows):
    x = x_ref[...].astype(jnp.float32)
    if mask_rows is not None:  # static: only emitted when the last tile is partial
        i = pl.program_id(0)
        row = jax.lax.broadcasted_iota(jnp.int32, (tile_rows, _LANES), 0)
        x = jnp.where((i * tile_rows + row) < mask_rows, x, 0.0)
    # (tile_rows, 512) -> (tile_rows//8, 8, 512): layout-preserving row grouping.
    part_ref[...] = jnp.sum(x.reshape(tile_rows // 8, 8, _LANES), axis=0)


# ---------------------------------------------------------------------------
# Tiled pass 2: stream tiles, subtract the SMEM-resident global mean.
# ---------------------------------------------------------------------------
def _subtract_kernel(mean_ref, x_ref, o_ref, *, compute_dtype):
    mean = mean_ref[0, 0].astype(compute_dtype)   # scalar read from SMEM
    o_ref[...] = (x_ref[...].astype(compute_dtype) - mean).astype(o_ref.dtype)


def _centered_layer(x):
    """X - X.mean() over all elements."""
    orig_shape = x.shape
    orig_dtype = x.dtype
    n = x.size

    if n == 0 or x.ndim == 0:          # degenerate cases: plain JAX
        return (x - jnp.mean(x)).astype(orig_dtype)

    itemsize = jnp.dtype(orig_dtype).itemsize
    compute_dtype = jnp.bfloat16 if orig_dtype == jnp.bfloat16 else jnp.float32
    inv_n = 1.0 / float(n)

    # --- lane-dense 2-D slab: free reshape when n % 512 == 0 (no pad copy) ---
    flat = x.reshape(-1)
    if n % _LANES == 0:
        rows = n // _LANES
        padded = False
    else:
        # TODO(synk): large unaligned sizes still pay a pad+slice copy; a
        # tail-split / 1-D kernel would remove it but isn't worth it here.
        rows = pl.cdiv(n, _LANES)
        padded = True
        flat = jnp.pad(flat, (0, rows * _LANES - n))   # zeros: sum unaffected
    x2d = flat.reshape(rows, _LANES)
    slab_bytes = rows * _LANES * itemsize

    if slab_bytes <= _FUSED_MAX_BYTES:
        # ------------------ fused single-call path ------------------
        out2d = pl.pallas_call(
            functools.partial(_fused_kernel, inv_n=inv_n, compute_dtype=compute_dtype),
            out_shape=jax.ShapeDtypeStruct((rows, _LANES), orig_dtype),
            compiler_params=pltpu.CompilerParams(vmem_limit_bytes=32 << 20),
            cost_estimate=pl.CostEstimate(
                flops=2 * rows * _LANES, transcendentals=0,
                bytes_accessed=2 * slab_bytes),
        )(x2d)
    else:
        # ------------------ tiled two-pass path ------------------
        max_tile_rows = max(8, (_TILE_BYTES // (_LANES * itemsize)) // 8 * 8)
        num_tiles = max(2, pl.cdiv(rows, max_tile_rows))
        if num_tiles % 2:                 # even grid: both v7x TCs stay busy
            num_tiles += 1
        tile_rows = _ceil_to(pl.cdiv(rows, num_tiles), 8)
        num_tiles = pl.cdiv(rows, tile_rows)
        tile_bytes = tile_rows * _LANES * itemsize
        vmem_limit = int(4 * tile_bytes + (8 << 20))
        mask_rows = rows if rows % tile_rows else None   # only mask partial tail

        # Pass 1: per-tile partial sums (parallel across tiles / TensorCores).
        partials = pl.pallas_call(
            functools.partial(_partial_sum_kernel,
                              tile_rows=tile_rows, mask_rows=mask_rows),
            out_shape=jax.ShapeDtypeStruct((8 * num_tiles, _LANES), jnp.float32),
            grid_spec=pltpu.PrefetchScalarGridSpec(
                num_scalar_prefetch=0,
                grid=(num_tiles,),
                in_specs=[pl.BlockSpec((tile_rows, _LANES), lambda i: (i, 0))],
                out_specs=pl.BlockSpec((8, _LANES), lambda i: (i, 0)),
            ),
            compiler_params=pltpu.CompilerParams(
                dimension_semantics=("parallel",),
                vmem_limit_bytes=vmem_limit,
            ),
            cost_estimate=pl.CostEstimate(
                flops=rows * _LANES, transcendentals=0,
                bytes_accessed=slab_bytes),
        )(x2d)

        # Tiny final combine outside the kernel (a few KiB of f32).
        mean2d = (jnp.sum(partials) * jnp.float32(inv_n)).reshape(1, 1)

        # Pass 2: subtract the mean, streaming tiles (parallel).
        out2d = pl.pallas_call(
            functools.partial(_subtract_kernel, compute_dtype=compute_dtype),
            out_shape=jax.ShapeDtypeStruct((rows, _LANES), orig_dtype),
            grid_spec=pltpu.PrefetchScalarGridSpec(
                num_scalar_prefetch=0,
                grid=(num_tiles,),
                in_specs=[
                    pl.BlockSpec(memory_space=pltpu.MemorySpace.SMEM),   # mean (1,1)
                    pl.BlockSpec((tile_rows, _LANES), lambda i: (i, 0)),  # x tile
                ],
                out_specs=pl.BlockSpec((tile_rows, _LANES), lambda i: (i, 0)),
            ),
            compiler_params=pltpu.CompilerParams(
                dimension_semantics=("parallel",),
                vmem_limit_bytes=vmem_limit,
            ),
            cost_estimate=pl.CostEstimate(
                flops=rows * _LANES, transcendentals=0,
                bytes_accessed=2 * slab_bytes),
        )(mean2d, x2d)

    out_flat = out2d.reshape(-1)
    if padded:
        out_flat = out_flat[:n]
    return out_flat.reshape(orig_shape)


centered_layer = jax.jit(_centered_layer)


if __name__ == "__main__":
    key = jax.random.PRNGKey(0)
    # Small NCHW input consistent with a generic forward pass -> fused path.
    x = jax.random.normal(key, (2, 4, 16, 16), dtype=jnp.float32)
    out = jax.block_until_ready(centered_layer(x))
    ref = x - jnp.mean(x)
    assert out.shape == x.shape and out.dtype == x.dtype
    assert jnp.allclose(out, ref, atol=1e-5, rtol=1e-5)
    assert abs(float(jnp.mean(out))) < 1e-4

    # Unaligned (non-multiple-of-512) shape -> padded fused path.
    x_odd = jax.random.normal(jax.random.PRNGKey(1), (3, 5, 7), dtype=jnp.float32)
    out_odd = jax.block_until_ready(centered_layer(x_odd))
    ref_odd = x_odd - jnp.mean(x_odd)
    assert out_odd.shape == x_odd.shape
    assert jnp.allclose(out_odd, ref_odd, atol=1e-5, rtol=1e-5)

    # Larger 512-aligned shape -> tiled two-pass path (no pad, even grid,
    # masked partial last tile).
    x_big = jax.random.normal(jax.random.PRNGKey(2), (1030, 1536), dtype=jnp.float32)
    out_big = jax.block_until_ready(centered_layer(x_big))
    ref_big = x_big - jnp.mean(x_big)
    assert out_big.shape == x_big.shape
    assert jnp.allclose(out_big, ref_big, atol=1e-5, rtol=1e-5)

    print("KERNEL_OK")
</pallas_src>

<mosaic_0001>
module attributes {stable_mosaic.version = 11 : i64} {
  func.func @_fused_kernel(%arg0: memref<4x512xf32, #tpu.memory_space<vmem>>, %arg1: memref<4x512xf32, #tpu.memory_space<vmem>>) attributes {dimension_semantics = [], scalar_prefetch = 0 : i64, scratch_operands = 0 : i64, tpu.core_type = #tpu.core_type<tc>} {
    %c0 = arith.constant 0 : index
    %c0_0 = arith.constant 0 : index
    %0 = vector.load %arg0[%c0, %c0_0] : memref<4x512xf32, #tpu.memory_space<vmem>>, vector<4x512xf32>
    %1 = vector.shape_cast %0 : vector<4x512xf32> to vector<1x4x512xf32>
    %cst = arith.constant dense<0.000000e+00> : vector<1xf32>
    %2 = vector.multi_reduction <add>, %1, %cst [1, 2] : vector<1x4x512xf32> to vector<1xf32>
    %3 = vector.shape_cast %2 : vector<1xf32> to vector<1x1x1xf32>
    %4 = vector.extract %3[0, 0, 0] : f32 from vector<1x1x1xf32>
    %cst_1 = arith.constant 4.8828125E-4 : f32
    %5 = arith.mulf %4, %cst_1 : f32
    %6 = vector.broadcast %5 : f32 to vector<4x512xf32>
    %7 = arith.subf %0, %6 : vector<4x512xf32>
    %c0_2 = arith.constant 0 : index
    %c0_3 = arith.constant 0 : index
    %8 = vector.load %arg1[%c0_2, %c0_3] : memref<4x512xf32, #tpu.memory_space<vmem>>, vector<4x512xf32>
    tpu.vector_store %arg1[%c0_2, %c0_3], %7 {strides = array<i32>} : memref<4x512xf32, #tpu.memory_space<vmem>>, vector<4x512xf32>,
    return
  }
}

</mosaic_0001>

<bundles_post_ra>
// kernel: _centered_layer.1
= control target key start
LH: loop header
LB: loop body
LE: loop exit
PB: predicated region body
PF: predicated region fallthrough
CT: control target
= control target key end

     0   :  { %vm16_vm0 = vcmask 1043456   ;;  %s69_s0 = inlined_call_operand.vmem [shape: f32[4,512], index: 0, kind: input, shape index: {}]   ;;  %s70_s1 = inlined_call_operand.vmem [shape: f32[4,512], index: 1, kind: output, shape index: {}]  }
   0x1   :  { %v8_v0 = vld [vmem:[%s69_s0] sm:$0xff]  ;;  %v9_v1 = vld [vmem:[%s69_s0 + $0x8] sm:$0xff] }
   0x2   :  { %v12_v2 = vcombine.high %v8_v0, %v8_v0  ;;  %v13_v3 = vcombine.high %v9_v1, %v9_v1  ;;  %v17_v4 = vsel %vm16_vm0, %v8_v0, 0.0  ;;  %v20_v6 = vsel %vm16_vm0, %v9_v1, 0.0 }
   0x4   :  { %v18_v5 = vsel %vm16_vm0, %v12_v2, 0.0  ;;  %v22_v8 = vsel %vm16_vm0, %v13_v3, 0.0 }
   0x5   :  { %v19_v7 = vadd.f32 %v18_v5, %v17_v4 }
   0x7   :  { %v21_v9 = vadd.f32 %v20_v6, %v19_v7 }
   0x9   :  { %v23_v10 = vadd.f32 %v22_v8, %v21_v9 }
   0xb   :  { %24 = vadd.xlane.f32.xlu0 %v23_v10 }
  0x94   :  { %v25_v11 = vpop.xlane.xlu0 %24 }
  0x95   :  { %v26_v12 = vrot.slane %v25_v11, 4 }
  0x97   :  { %v27_v13 = vadd.f32 %v26_v12, %v25_v11 }
  0x99   :  { %v28_v14 = vrot.slane %v27_v13, 2 }
  0x9b   :  { %v29_v15 = vadd.f32 %v28_v14, %v27_v13 }
  0x9d   :  { %v30_v16 = vrot.slane %v29_v15, 1 }
  0x9f   :  { %v31_v17 = vadd.f32 %v30_v16, %v29_v15 }
  0xa1   :  { %43 = vpush %v31_v17 }
  0xd2   :  { %s44_s10 = spop %43 }
  0xd3   :  { %s33_s0 = smul.f32 0.00048828125, %s44_s10 }
  0xd5   :  { %v34_v18 = vstv %s33_s0 }
  0xd6   :  { %v35_v19 = vsub.f32 %v8_v0, %v34_v18  ;;  %v36_v20 = vsub.f32 %v9_v1, %v34_v18 }
  0xd8   :  { %37 = vst [vmem:[%s70_s1] sm:$0xff] %v35_v19  ;;  %38 = vst [vmem:[%s70_s1 + $0x8] sm:$0xff] %v36_v20 }

</bundles_post_ra>
